<compile_context>
chip_gen: v7x
topology: tpu7x:2x2x1
jax: 0.10.0
libtpu: 0.0.40
codegen_flags: <defaults>
</compile_context>

<pallas_src>
import jax
import jax.numpy as jnp
from jax import lax
from jax.experimental import pallas as pl
from jax.experimental.pallas import tpu as pltpu


def _vmem_capacity_bytes():
    """Per-core VMEM capacity; conservative fallback = v7x (64 MiB/TC)."""
    try:
        return int(pltpu.get_tpu_info().vmem_capacity_bytes)
    except Exception:
        return 64 * 1024 * 1024


# ----------------------------- kernel -------------------------------

def _patch_proj_kernel(a_ref, w_ref, b_ref, o_ref):
    """One image per grid step.

    a_ref: (1, HW, K)  flattened patches of image b (rows = (hp, wp))
    w_ref: (E, K)      VMEM-resident projection weight (OIHW flattened on K)
    b_ref: (E, 1)      VMEM-resident bias
    o_ref: (1, E, HW)  NCHW-ordered output tile for image b
    """
    # NT matmul (contract K on both operands): no operand transposes needed,
    # f32 accumulation on the MXU, result already (E, HW) == NCHW layout.
    acc = lax.dot_general(
        w_ref[...], a_ref[0],
        dimension_numbers=(((1,), (1,)), ((), ())),
        preferred_element_type=jnp.float32,
    )
    o_ref[0] = (acc + b_ref[...].astype(jnp.float32)).astype(o_ref.dtype)


# ----------------------------- wrapper ------------------------------

def patch_embedding_forward(x, weight, bias, patch_size):
    """PoolFormer PatchEmbedding forward (Conv2d k=s=patch_size, p=0 + Identity).

    x:      (B, C, H, W)   NCHW
    weight: (E, C, ps, ps) OIHW
    bias:   (E,)
    returns (B, E, H//ps, W//ps) NCHW, matching nn.Conv2d.
    """
    B, C, H, W = x.shape
    E = weight.shape[0]
    ps = patch_size
    Hp, Wp = H // ps, W // ps
    if (H % ps) or (W % ps):               # VALID truncation, like the conv
        x = x[:, :, :Hp * ps, :Wp * ps]
    HW = Hp * Wp
    K = C * ps * ps

    # im2col (single XLA transpose pass; see TODO at top):
    # (B,C,Hp,ps,Wp,ps) -> (B,Hp,Wp,C,ps,ps) -> (B, HW, K).  No padding.
    a = x.reshape(B, C, Hp, ps, Wp, ps)
    a = jnp.transpose(a, (0, 2, 4, 1, 3, 5)).reshape(B, HW, K)

    wf = weight.reshape(E, K)               # K order (c, i, j) matches `a`
    b2 = bias.reshape(E, 1)

    itemsize = jnp.dtype(x.dtype).itemsize
    # Working set: double-buffered A/O streams + resident weight/bias.
    needed = 2 * (HW * K + E * HW) * itemsize + 2 * (E * K + E) * itemsize
    cap = int(0.85 * _vmem_capacity_bytes())
    vmem_limit = int(min(max(2 * needed + (4 << 20), 32 << 20), cap))

    cost = pl.CostEstimate(
        flops=2 * B * HW * K * E,
        transcendentals=0,
        bytes_accessed=(B * HW * K + E * K + B * E * HW + E) * itemsize,
    )

    out = pl.pallas_call(
        _patch_proj_kernel,
        out_shape=jax.ShapeDtypeStruct((B, E, HW), x.dtype),
        grid_spec=pltpu.PrefetchScalarGridSpec(
            num_scalar_prefetch=0,
            grid=(B,),
            in_specs=[
                pl.BlockSpec((1, HW, K), lambda b: (b, 0, 0)),  # patches
                pl.BlockSpec((E, K), lambda b: (0, 0)),         # resident W
                pl.BlockSpec((E, 1), lambda b: (0, 0)),         # resident bias
            ],
            out_specs=pl.BlockSpec((1, E, HW), lambda b: (b, 0, 0)),
        ),
        compiler_params=pltpu.CompilerParams(
            dimension_semantics=("parallel",),   # batches shard across TCs
            vmem_limit_bytes=vmem_limit,
        ),
        cost_estimate=cost,
    )(a, wf, b2)

    # (B, E, HW) is already NCHW-ordered; splitting HW -> (Hp, Wp) is free.
    return out.reshape(B, E, Hp, Wp)


if __name__ == "__main__":
    # Small shapes consistent with the module: scaled-down PatchEmbedding.
    B, C, H, W = 2, 4, 16, 16
    patch_size = 8
    embed_dim = 32

    key = jax.random.PRNGKey(0)
    kx, kw, kb = jax.random.split(key, 3)
    x = jax.random.normal(kx, (B, C, H, W), dtype=jnp.float32)
    weight = jax.random.normal(kw, (embed_dim, C, patch_size, patch_size),
                               dtype=jnp.float32) * 0.02
    bias = jax.random.normal(kb, (embed_dim,), dtype=jnp.float32) * 0.02

    y = patch_embedding_forward(x, weight, bias, patch_size)
    y = jax.block_until_ready(y)

    # Reference check against XLA conv (same semantics as nn.Conv2d).
    y_ref = lax.conv_general_dilated(
        x, weight, window_strides=(patch_size, patch_size), padding="VALID",
        dimension_numbers=("NCHW", "OIHW", "NCHW"))
    y_ref = y_ref + bias.reshape(1, embed_dim, 1, 1)

    assert y.shape == (B, embed_dim, H // patch_size, W // patch_size)
    assert jnp.allclose(y, y_ref, atol=1e-4, rtol=1e-4)

    print("KERNEL_OK")
</pallas_src>

<mosaic_0001>
module attributes {stable_mosaic.version = 11 : i64} {
  func.func @_patch_proj_kernel(%arg0: i32, %arg1: memref<1x4x256xf32, #tpu.memory_space<vmem>>, %arg2: memref<32x256xf32, #tpu.memory_space<vmem>>, %arg3: memref<32x1xf32, #tpu.memory_space<vmem>>, %arg4: memref<1x32x4xf32, #tpu.memory_space<vmem>>) attributes {dimension_semantics = [#tpu.dimension_semantics<parallel>], iteration_bounds = array<i64: 2>, scalar_prefetch = 0 : i64, scratch_operands = 0 : i64, tpu.core_type = #tpu.core_type<tc>, window_params = [{transform_indices = @transform_0, window_bounds = array<i64: 1, 4, 256>}, {pipeline_mode = #tpu.pipeline_mode<synchronous>, transform_indices = @transform_1, window_bounds = array<i64: 32, 256>}, {pipeline_mode = #tpu.pipeline_mode<synchronous>, transform_indices = @transform_2, window_bounds = array<i64: 32, 1>}, {transform_indices = @transform_3, window_bounds = array<i64: 1, 32, 4>}]} {
    %c0 = arith.constant 0 : index
    %c0_0 = arith.constant 0 : index
    %0 = vector.load %arg2[%c0, %c0_0] : memref<32x256xf32, #tpu.memory_space<vmem>>, vector<32x256xf32>
    %c0_1 = arith.constant 0 : index
    %c0_2 = arith.constant 0 : index
    %c0_3 = arith.constant 0 : index
    %1 = vector.load %arg1[%c0_1, %c0_2, %c0_3] : memref<1x4x256xf32, #tpu.memory_space<vmem>>, vector<1x4x256xf32>
    %2 = vector.shape_cast %1 : vector<1x4x256xf32> to vector<4x256xf32>
    %cst = arith.constant dense<0.000000e+00> : vector<32x4xf32>
    %3 = tpu.matmul %0, %2, %cst {dimension_numbers = #tpu.dot_dimension_numbers<[1], [1], [0], [0], [0, 0, 1, 0], [], []>} : vector<32x256xf32>, vector<4x256xf32>, vector<32x4xf32> -> vector<32x4xf32>
    %c0_4 = arith.constant 0 : index
    %c0_5 = arith.constant 0 : index
    %4 = vector.load %arg3[%c0_4, %c0_5] : memref<32x1xf32, #tpu.memory_space<vmem>>, vector<32x1xf32>
    %5 = vector.broadcast %4 : vector<32x1xf32> to vector<32x4xf32>
    %6 = arith.addf %3, %5 : vector<32x4xf32>
    %c0_6 = arith.constant 0 : index
    %c0_7 = arith.constant 0 : index
    %c0_8 = arith.constant 0 : index
    %7 = vector.load %arg4[%c0_6, %c0_7, %c0_8] : memref<1x32x4xf32, #tpu.memory_space<vmem>>, vector<1x32x4xf32>
    %8 = vector.shape_cast %7 : vector<1x32x4xf32> to vector<32x4xf32>
    %9 = vector.shape_cast %6 : vector<32x4xf32> to vector<1x32x4xf32>
    tpu.vector_store %arg4[%c0_6, %c0_7, %c0_8], %9 {strides = array<i32>} : memref<1x32x4xf32, #tpu.memory_space<vmem>>, vector<1x32x4xf32>,
    return
  }
  func.func @transform_0(%arg0: i32) -> (i32, i32, i32) {
    %c0_i32 = arith.constant 0 : i32
    %c0_i32_0 = arith.constant 0 : i32
    %c0_i32_1 = arith.constant 0 : i32
    return %arg0, %c0_i32, %c0_i32_0 : i32, i32, i32
  }
  func.func @transform_1(%arg0: i32) -> (i32, i32) {
    %c0_i32 = arith.constant 0 : i32
    %c0_i32_0 = arith.constant 0 : i32
    %c0_i32_1 = arith.constant 0 : i32
    return %c0_i32, %c0_i32_0 : i32, i32
  }
  func.func @transform_2(%arg0: i32) -> (i32, i32) {
    %c0_i32 = arith.constant 0 : i32
    %c0_i32_0 = arith.constant 0 : i32
    %c0_i32_1 = arith.constant 0 : i32
    return %c0_i32, %c0_i32_0 : i32, i32
  }
  func.func @transform_3(%arg0: i32) -> (i32, i32, i32) {
    %c0_i32 = arith.constant 0 : i32
    %c0_i32_0 = arith.constant 0 : i32
    %c0_i32_1 = arith.constant 0 : i32
    return %arg0, %c0_i32, %c0_i32_0 : i32, i32, i32
  }
}

</mosaic_0001>

<bundles_post_ra>
// kernel: tpu_custom_call.1
= control target key start
LH: loop header
LB: loop body
LE: loop exit
PB: predicated region body
PF: predicated region fallthrough
CT: control target
= control target key end

     0   :  { %8 = vsyncpa [#allocation3], 0  ;;  %s485_s12 = smov 0   ;;  %s561_s0 = inlined_call_operand.vmem [shape: f32[2,4,256], index: 0, kind: input, shape index: {}]   ;;  %s562_s1 = inlined_call_operand.hbm [shape: f32[32,256], index: 1, kind: input, shape index: {}]   ;;  %s563_s2 = inlined_call_operand.vmem [shape: f32[32,1], index: 2, kind: input, shape index: {}]   ;;  %s564_s3 = inlined_call_operand.vmem [shape: f32[2,32,4], index: 3, kind: output, shape index: {}]  }
   0x1 LB: > { %s491_s13 = sadd.s32 4294967295, %s459_s12   ;;  %p381_p0 = scmp.ge.s32.totalorder %s459_s12, 1  ;;  %s459_s12 = sphi %s485_s12, %s14_s12  }
   0x2   : > { %p113_p1 = scmp.lt.s32.totalorder %s459_s12, 3  ;;  %s461_s14 = smov [#allocation2]  }
   0x3   : > { %s125_s15 = sshll.u32 %s461_s14, 4  ;;  %p565_p3 = scmp.eq.s32.totalorder %s491_s13, 0  ;;  %s126_s15 = int_to_ptr.vmem [resolvable:$true] %s125_s15 }
   0x4   : > { %p495_p2 = pnand %p381_p0, %p113_p1  ;;  %s421_s20 = scalar_lea.hbm %s562_s1, 1024 }
   0x5   : > { %p422_p6 = scmp.ne.s32.totalorder %s562_s1, %s421_s20  ;;  %p428_p10 = scmp.lt.u32.totalorder %s421_s20, %s562_s1 }
   0x6   : > { %s567_s16 = scalar_select %p495_p2, 1, 0 }
   0x7   : > { %p400_p4 = pneg %p495_p2 }
   0x9   : > { %p504_p5 = pnand %p565_p3, %p400_p4 }
   0xb   : > { %p423_p7 = pneg %p504_p5 }
   0xd   : > { %p424_p8 = pnand %p423_p7, %p422_p6 }
   0xf   : > { %p425_p9 = pneg %p424_p8 }
  0x11   : > { %p430_p11 = pnand %p428_p10, %p425_p9 }
  0x13   : > { %433 = shalt.err (!%p430_p11)
}
  0x14   : > { %s434_s25 = scalar_lea.vmem %s126_s15, 1024  ;;  %p442_p1 = scmp.lt.s32.totalorder %s126_s15, %s126_s15 }
  0x15   : > { %p435_p12 = scmp.ne.s32.totalorder %s126_s15, %s434_s25  ;;  %p443_p4 = scmp.lt.s32.totalorder %s434_s25, %s434_s25 }
  0x17   : > { %p437_p13 = pnand %p435_p12, %p423_p7  ;;  %p444_p3 = por %p443_p4, %p442_p1 }
  0x19   : > { %p438_p0 = pneg %p437_p13 }
  0x1b   : > { %p445_p2 = pnand %p444_p3, %p438_p0 }
  0x1d   : > { %448 = shalt.err (!%p445_p2)
}
  0x1e   : > { %s462_s26 = smov 256   ;;  %s463_s27 = smov 16  }
  0x1f   : > { %403 = dma.hbm_to_vmem [thread:$0]  (!%p504_p5), %s562_s1, 1024, %s126_s15, [#allocation3], %s462_s26, %s462_s26, %s463_s27  }
  0x20   : > { %p569_p6 = scmp.ne.s32.totalorder %s567_s16, 0 }
  0x21   : > { %p570_p8 = scmp.eq.s32.totalorder (!%p569_p6), %s491_s13, 0 }
  0x22   : > { %152 = sbr.rel (%p569_p6) target bundleno = 273 (0x111), region = 32 }
  0x29   : > { %454 = dma.done.wait (%p570_p8), [#allocation3], 1024   ;;  %p571_p7 = pmov %p570_p8 }
  0x2a   : > { %p176_p2 = scmp.lt.s32.totalorder %s491_s13, 1  ;;  %v464_v0 = vmov 0   ;;  %v187_v2 = vld [vmem:[#allocation2 + $0x8] sm:$0xff]  ;;  %v197_v5 = vld [vmem:[%s563_s2 + $0x10] sm:$0xff]  ;;  %v195_v6 = vld [vmem:[%s563_s2] sm:$0xff]  ;;  %vm307_vm0 = vcmask 31744  }
  0x2b   : > { %456 = vsyncadd (%p571_p7), [#allocation3], 4294966272  ;;  %419 = vset.pattern.permute.xlu1 %v464_v0  ;;  %418 = vset.pattern.permute.xlu0 %v464_v0  ;;  %v191_v3 = vld [vmem:[#allocation2 + $0x28] sm:$0xff]  ;;  %v186_v7 = vld [vmem:[#allocation2] sm:$0xff] }
  0x2c   : > { %s573_s13 = smov (!%p176_p2, %s491_s13), 1  ;;  %286 = vmatprep.mubr.f32.mxu0 %v187_v2  ;;  %296 = vmatprep.mubr.f32.mxu1 %v191_v3  ;;  %v190_v8 = vld [vmem:[#allocation2 + $0x20] sm:$0xff]  ;;  %v189_v9 = vld [vmem:[#allocation2 + $0x18] sm:$0xff]  ;;  %v196_v12 = vld [vmem:[%s563_s2 + $0x8] sm:$0xff] }
  0x2d   : > { %s392_s30 = sshll.u32 %s573_s13, 3  ;;  %v193_v10 = vld [vmem:[#allocation2 + $0x38] sm:$0xff]  ;;  %211 = vperm.xlu1 %419, %v197_v5   ;;  %201 = vperm.xlu0 %418, %v195_v6   ;;  %v188_v13 = vld [vmem:[#allocation2 + $0x10] sm:$0xff]  ;;  %s393_s17 = sshll.u32 %s573_s13, 5 }
  0x2e   : > { %s180_s6 = scalar_lea.vmem %s561_s0, %s392_s30  ;;  %v198_v11 = vld [vmem:[%s563_s2 + $0x18] sm:$0xff]  ;;  %v192_v14 = vld [vmem:[#allocation2 + $0x30] sm:$0xff]  ;;  %s185_s20 = scalar_lea.vmem %s564_s3, %s393_s17 }
  0x2f   : > { %v194_v1 = vld [vmem:[%s180_s6] sm:$0xff] }
  0x30   : > { %v220_v4 = vcombine.high %v194_v1, %v194_v1 }
  0x31   : > { %216 = vperm.xlu1 %419, %v198_v11   ;;  %206 = vperm.xlu0 %418, %v196_v12  }
  0x32   : > { %222 = vmatprep.subr.mxu0 %v220_v4  ;;  %394 = vmatprep.subr.mxu1 %v220_v4 }
  0x33   : > { %223 = vmatpush1.xpose.msra.mxu0 %v194_v1  ;;  %395 = vmatpush1.xpose.msra.mxu1 %v194_v1 }
  0x36   : > { %287 = vmatmul.mubr.f32.vlgmr.msra.gmra.mrb[0].mxu0 %v186_v7  ;;  %297 = vmatmul.mubr.f32.vlgmr.msra.gmra.mrb[0].mxu1 %v190_v8 }
  0x37   : > { %291 = vmatprep.mubr.f32.mxu0 %v189_v9  ;;  %301 = vmatprep.mubr.f32.mxu1 %v193_v10 }
  0x3a   : > { %292 = vmatmul.mubr.f32.gmra.mrb[2].mxu0 %v188_v13  ;;  %302 = vmatmul.mubr.f32.gmra.mrb[2].mxu1 %v192_v14 }
  0xac   : > { %v212_v15 = vpop.permute.xlu1 %211  ;;  %v202_v16 = vpop.permute.xlu0 %201 }
  0xb0   : > { %v217_v23 = vpop.permute.xlu1 %216  ;;  %v207_v24 = vpop.permute.xlu0 %206 }
 0x109   : > { %v288_v17 = vpop.f32.mrb[0].mxu0  ;;  %v298_v18 = vpop.f32.mrb[0].mxu1 }
 0x10a   : > { %v289_v19 = vadd.f32 %v288_v17, %v202_v16  ;;  %v299_v20 = vadd.f32 %v298_v18, %v212_v15  ;;  %v290_v21 = vpop.f32.mrb[1].mxu0  ;;  %v300_v22 = vpop.f32.mrb[1].mxu1 }
 0x10c   : > { %308 = vst.msk [vmem:[%s185_s20] sm:$0xff] %vm307_vm0, %v289_v19  ;;  %310 = vst.msk [vmem:[%s185_s20 + $0x10] sm:$0xff] %vm307_vm0, %v299_v20 }
 0x10d   : > { %v293_v25 = vpop.f32.mrb[2].mxu0  ;;  %v303_v26 = vpop.f32.mrb[2].mxu1 }
 0x10e   : > { %v294_v27 = vadd.f32 %v293_v25, %v207_v24  ;;  %v304_v28 = vadd.f32 %v303_v26, %v217_v23  ;;  %v295_v29 = vpop.f32.mrb[3].mxu0  ;;  %v305_v30 = vpop.f32.mrb[3].mxu1 }
 0x110   : > { %309 = vst.msk [vmem:[%s185_s20 + $0x8] sm:$0xff] %vm307_vm0, %v294_v27  ;;  %311 = vst.msk [vmem:[%s185_s20 + $0x18] sm:$0xff] %vm307_vm0, %v304_v28 }
 0x111 PF: > { %s14_s12 = sadd.s32 1, %s459_s12  }
 0x112   : > { %p11_p3 = scmp.ge.s32.totalorder %s14_s12, 4  }
 0x114   :  { %13 = sbr.rel (!%p11_p3) target bundleno = 1 (0x1), region = 67 }
 0x11b   :  { %333 = vsyncpa [#allocation3], 1 }
 0x11c   :  { %335 = vsyncpa [#allocation3 + $0x1], 1 }

</bundles_post_ra>
